<compile_context>
chip_gen: v6e
topology: v6e:2x2x1
jax: 0.10.0
libtpu: 0.0.40
codegen_flags: <defaults>
</compile_context>

<pallas_src>
import functools
import math

import jax
import jax.numpy as jnp
from jax.experimental import pallas as pl
from jax.experimental.pallas import tpu as pltpu

_LANE = 128


def _round_up(x, m):
    return (x + m - 1) // m * m


def _round_down(x, m):
    return (x // m) * m


def _physical_vmem_bytes():
    try:
        return int(pltpu.get_tpu_info().vmem_capacity_bytes)
    except Exception:
        return 64 << 20  # conservative: v7x per-core VMEM


# ---------------------------------------------------------------------------
# Trained_VGG11.forward concrete step: (x - mean) / std for 2-D inputs.
# ---------------------------------------------------------------------------
def _normalize_kernel(x_ref, mean_ref, inv_std_ref, o_ref):
    xf = x_ref[...].astype(jnp.float32)
    o_ref[...] = ((xf - mean_ref[...]) * inv_std_ref[...]).astype(o_ref.dtype)


def normalize_2d(x, mean, std):
    B, D = x.shape
    mean2 = mean.reshape(1, D).astype(jnp.float32)
    inv_std2 = (1.0 / std.astype(jnp.float32)).reshape(1, D)
    return pl.pallas_call(
        _normalize_kernel,
        out_shape=jax.ShapeDtypeStruct((B, D), x.dtype),
        grid=(1,),
        in_specs=[
            pl.BlockSpec((B, D), lambda i: (0, 0)),
            pl.BlockSpec((1, D), lambda i: (0, 0)),
            pl.BlockSpec((1, D), lambda i: (0, 0)),
        ],
        out_specs=pl.BlockSpec((B, D), lambda i: (0, 0)),
    )(x, mean2, inv_std2)


def trained_vgg11_forward(x, mean, std):
    """Concrete in-module compute of Trained_VGG11.forward (2-D path)."""
    # TODO(synk): the wrapped `self.model` (full VGG11 backbone) is opaque /
    # unspecified; only its ECA channel-attention block is kernelized below.
    if x.ndim == 2:
        return normalize_2d(x, mean, std)
    return x


# ---------------------------------------------------------------------------
# ECA channel attention — fused single pass (per-batch slab resident in VMEM).
# ---------------------------------------------------------------------------
def _eca_fused_kernel(x_ref, w_ref, o_ref, *, inv_hw):
    # x_ref/o_ref: (1, C, HW)   w_ref: (C, C)
    x = x_ref[0].astype(jnp.float32)                          # (C, HW)
    mean = jnp.sum(x, axis=-1, keepdims=True) * inv_hw        # (C, 1)
    # Conv1d(C, C, k, padding='same') on a length-1 sequence == matvec with
    # the kernel's center tap (done once per batch element).
    y = jnp.dot(w_ref[...], mean, preferred_element_type=jnp.float32)
    s = jax.nn.sigmoid(y)                                     # (C, 1)
    o_ref[0] = (x * s).astype(o_ref.dtype)


def _eca_fused(x_flat, w_center, vmem_limit):
    B, C, HW = x_flat.shape
    itemsize = jnp.dtype(x_flat.dtype).itemsize
    return pl.pallas_call(
        functools.partial(_eca_fused_kernel, inv_hw=1.0 / HW),
        out_shape=jax.ShapeDtypeStruct((B, C, HW), x_flat.dtype),
        grid_spec=pltpu.PrefetchScalarGridSpec(
            num_scalar_prefetch=0,
            grid=(B,),
            in_specs=[
                pl.BlockSpec((1, C, HW), lambda b: (b, 0, 0)),
                pl.BlockSpec((C, C), lambda b: (0, 0)),
            ],
            out_specs=pl.BlockSpec((1, C, HW), lambda b: (b, 0, 0)),
        ),
        compiler_params=pltpu.CompilerParams(
            dimension_semantics=("parallel",),
            vmem_limit_bytes=int(vmem_limit),
        ),
        cost_estimate=pl.CostEstimate(
            flops=2 * B * C * HW + 2 * B * C * C,
            transcendentals=B * C,
            bytes_accessed=2 * B * C * HW * itemsize + C * C * 4,
        ),
    )(x_flat, w_center)


# ---------------------------------------------------------------------------
# ECA channel attention — two-pass streaming fallback (slab too big for VMEM).
# ---------------------------------------------------------------------------
def _pool_kernel(x_ref, w_ref, s_ref, acc_ref, *, hw, thw, inv_hw):
    # x_ref: (1, C, thw)  w_ref: (C, C)  s_ref: (1, C, 1)  acc_ref: (C, 128) f32
    t = pl.program_id(1)

    @pl.when(t == 0)
    def _():
        acc_ref[...] = jnp.zeros_like(acc_ref)

    x = x_ref[0].astype(jnp.float32)                          # (C, thw)
    # Mask out-of-range lanes of the (possibly ragged) last tile; divide by the
    # true HW so the mean is exact.
    lane = jax.lax.broadcasted_iota(jnp.int32, x.shape, 1)
    x = jnp.where(t * thw + lane < hw, x, 0.0)
    # Lane-partial sums: pure VPU vreg adds into a (C, 128) accumulator; the
    # single cross-lane (XLU) reduce is deferred to the finalizer.
    partial = x[:, :_LANE]
    for j in range(1, thw // _LANE):
        partial = partial + x[:, j * _LANE:(j + 1) * _LANE]
    acc_ref[...] += partial

    @pl.when(t == pl.num_programs(1) - 1)
    def _():
        mean = jnp.sum(acc_ref[...], axis=-1, keepdims=True) * inv_hw  # (C, 1)
        y = jnp.dot(w_ref[...], mean, preferred_element_type=jnp.float32)
        s_ref[0] = jax.nn.sigmoid(y).astype(s_ref.dtype)


def _scale_kernel(x_ref, s_ref, o_ref):
    # Pure lane-dense load-mul-store stream; the ragged last tile is handled by
    # the bounds-aware edge-block writeback.
    o_ref[0] = (x_ref[0].astype(jnp.float32) * s_ref[0]).astype(o_ref.dtype)


def _eca_streaming(x_flat, w_center, phys_vmem, spatial_tile=None):
    B, C, HW = x_flat.shape
    itemsize = jnp.dtype(x_flat.dtype).itemsize

    # Byte-budgeted, lane-dense spatial tile (~2 MiB per (1, C, thw) block),
    # capped so the unrolled lane-partial sum stays short.
    if spatial_tile is None:
        thw = _round_down(max((2 << 20) // (C * itemsize), _LANE), _LANE)
    else:
        thw = _round_up(spatial_tile, _LANE)
    thw = max(_LANE, min(thw, 64 * _LANE, max(_round_down(HW, _LANE), _LANE)))
    n_t = pl.cdiv(HW, thw)

    blk_bytes = C * thw * itemsize
    vmem_limit = int(min(int(phys_vmem * 0.9),
                         max(32 << 20, 6 * blk_bytes + (2 << 20))))

    # Pass 1: pooled channel statistics -> per-(batch, channel) sigmoid scale.
    scale = pl.pallas_call(
        functools.partial(_pool_kernel, hw=HW, thw=thw, inv_hw=1.0 / HW),
        out_shape=jax.ShapeDtypeStruct((B, C, 1), jnp.float32),
        grid_spec=pltpu.PrefetchScalarGridSpec(
            num_scalar_prefetch=0,
            grid=(B, n_t),
            in_specs=[
                pl.BlockSpec((1, C, thw), lambda b, t: (b, 0, t)),
                pl.BlockSpec((C, C), lambda b, t: (0, 0)),
            ],
            out_specs=pl.BlockSpec((1, C, 1), lambda b, t: (b, 0, 0)),
            scratch_shapes=[pltpu.VMEM((C, _LANE), jnp.float32)],
        ),
        compiler_params=pltpu.CompilerParams(
            dimension_semantics=("parallel", "arbitrary"),
            vmem_limit_bytes=vmem_limit,
        ),
        cost_estimate=pl.CostEstimate(
            flops=B * C * HW + 2 * B * C * C,
            transcendentals=B * C,
            bytes_accessed=B * C * HW * itemsize + B * C * 4 + C * C * 4,
        ),
    )(x_flat, w_center)

    # Pass 2: lane-dense elementwise scaling stream, both grid axes parallel.
    out_flat = pl.pallas_call(
        _scale_kernel,
        out_shape=jax.ShapeDtypeStruct((B, C, HW), x_flat.dtype),
        grid_spec=pltpu.PrefetchScalarGridSpec(
            num_scalar_prefetch=0,
            grid=(B, n_t),
            in_specs=[
                pl.BlockSpec((1, C, thw), lambda b, t: (b, 0, t)),
                pl.BlockSpec((1, C, 1), lambda b, t: (b, 0, 0)),
            ],
            out_specs=pl.BlockSpec((1, C, thw), lambda b, t: (b, 0, t)),
        ),
        compiler_params=pltpu.CompilerParams(
            dimension_semantics=("parallel", "parallel"),
            vmem_limit_bytes=vmem_limit,
        ),
        cost_estimate=pl.CostEstimate(
            flops=B * C * HW,
            transcendentals=0,
            bytes_accessed=2 * B * C * HW * itemsize + B * C * 4,
        ),
    )(x_flat, scale)
    return out_flat


def eca_forward(x, conv_weight, *, force_streaming=False, spatial_tile=None):
    """ECA channel-attention forward.  x: (B, C, H, W); conv_weight: (C, C, k).

    Chooses a fused, per-batch VMEM-resident single pass when the (C, HW) slab
    fits the chip's VMEM budget, else a two-pass streaming path.
    """
    # TODO(synk): assumes the module's Conv1d(C, C, k, padding='same') acts on
    # the length-1 pooled sequence (center-tap matvec), matching the bundled
    # reference; canonical ECA Conv1d(1, 1, k) along channels would differ.
    B, C, H, W = x.shape
    k = conv_weight.shape[-1]
    w_center = conv_weight[:, :, k // 2].astype(jnp.float32)    # (C, C)
    HW = H * W
    x_flat = x.reshape(B, C, HW)
    itemsize = jnp.dtype(x.dtype).itemsize

    phys_vmem = _physical_vmem_bytes()
    slab_bytes = C * HW * itemsize
    # in (2-deep) + out (2-deep) + one f32 working slab + headroom.
    fused_need = 4 * slab_bytes + C * HW * 4 + (2 << 20)

    if not force_streaming and fused_need <= int(phys_vmem * 0.75):
        vmem_limit = min(max(fused_need, 32 << 20), int(phys_vmem * 0.9))
        out_flat = _eca_fused(x_flat, w_center, vmem_limit)
    else:
        out_flat = _eca_streaming(x_flat, w_center, phys_vmem, spatial_tile)
    return out_flat.reshape(B, C, H, W)


# ---------------------------------------------------------------------------
# Pure-JAX references and deterministic parameter construction.
# ---------------------------------------------------------------------------
def eca_reference(x, conv_weight):
    B, C, H, W = x.shape
    k = conv_weight.shape[-1]
    y = jnp.mean(x.astype(jnp.float32), axis=(2, 3)).reshape(B, C, 1)
    pad = k // 2
    y_pad = jnp.pad(y, ((0, 0), (0, 0), (pad, pad)))          # 'same' zero pad
    y = jnp.einsum("oij,bij->bo", conv_weight.astype(jnp.float32), y_pad)
    y = jax.nn.sigmoid(y).reshape(B, C, 1, 1)
    return (x * y).astype(x.dtype)


def make_params(in_channels, key, b=1, gamma=2):
    """Deterministic Conv1d weight with the ECANet kernel-size rule."""
    kernel_size = int(abs((math.log(in_channels, 2) + b) / gamma))
    if kernel_size % 2 == 0:
        kernel_size += 1
    fan_in = in_channels * kernel_size
    bound = 1.0 / math.sqrt(fan_in)
    w = jax.random.uniform(key, (in_channels, in_channels, kernel_size),
                           minval=-bound, maxval=bound, dtype=jnp.float32)
    return w, kernel_size


if __name__ == "__main__":
    root = jax.random.PRNGKey(0)
    k1, k2, k3, k4, k5 = jax.random.split(root, 5)

    # ---- Trained_VGG11.forward 2-D path: (x - mean) / std ------------------
    Bn, D = 4, 32
    x2d = jax.random.normal(k1, (Bn, D), dtype=jnp.float32)
    mean = jax.random.normal(k2, (D,), dtype=jnp.float32)
    std = jax.random.uniform(k3, (D,), minval=0.5, maxval=2.0, dtype=jnp.float32)
    norm = jax.block_until_ready(trained_vgg11_forward(x2d, mean, std))
    norm_ref = (x2d - mean) / std
    assert norm.shape == (Bn, D)
    assert jnp.allclose(norm, norm_ref, atol=1e-5, rtol=1e-5), "normalize mismatch"

    # ---- ECA channel-attention block of the wrapped model ------------------
    B, C, H, W = 2, 8, 18, 18          # HW = 324: exercises ragged spatial tiles
    x = jax.random.normal(k4, (B, C, H, W), dtype=jnp.float32)
    conv_w, _ = make_params(C, k5)
    ref = eca_reference(x, conv_w)

    out_fused = jax.block_until_ready(eca_forward(x, conv_w))
    assert out_fused.shape == (B, C, H, W)
    assert jnp.allclose(out_fused, ref, atol=1e-5, rtol=1e-5), "fused mismatch"

    out_stream = jax.block_until_ready(
        eca_forward(x, conv_w, force_streaming=True, spatial_tile=128))
    assert jnp.allclose(out_stream, ref, atol=1e-5, rtol=1e-5), "streaming mismatch"

    print("KERNEL_OK")
</pallas_src>

<mosaic_0001>
module attributes {stable_mosaic.version = 11 : i64} {
  func.func @_normalize_kernel(%arg0: i32, %arg1: memref<4x32xf32, #tpu.memory_space<vmem>>, %arg2: memref<1x32xf32, #tpu.memory_space<vmem>>, %arg3: memref<1x32xf32, #tpu.memory_space<vmem>>, %arg4: memref<4x32xf32, #tpu.memory_space<vmem>>) attributes {dimension_semantics = [#tpu.dimension_semantics<arbitrary>], iteration_bounds = array<i64: 1>, scalar_prefetch = 0 : i64, scratch_operands = 0 : i64, tpu.core_type = #tpu.core_type<tc>, window_params = [{pipeline_mode = #tpu.pipeline_mode<synchronous>, transform_indices = @transform_0, window_bounds = array<i64: 4, 32>}, {pipeline_mode = #tpu.pipeline_mode<synchronous>, transform_indices = @transform_1, window_bounds = array<i64: 1, 32>}, {pipeline_mode = #tpu.pipeline_mode<synchronous>, transform_indices = @transform_2, window_bounds = array<i64: 1, 32>}, {pipeline_mode = #tpu.pipeline_mode<synchronous>, transform_indices = @transform_3, window_bounds = array<i64: 4, 32>}]} {
    %c0 = arith.constant 0 : index
    %c0_0 = arith.constant 0 : index
    %0 = vector.load %arg1[%c0, %c0_0] : memref<4x32xf32, #tpu.memory_space<vmem>>, vector<4x32xf32>
    %c0_1 = arith.constant 0 : index
    %c0_2 = arith.constant 0 : index
    %1 = vector.load %arg2[%c0_1, %c0_2] : memref<1x32xf32, #tpu.memory_space<vmem>>, vector<1x32xf32>
    %2 = vector.broadcast %1 : vector<1x32xf32> to vector<4x32xf32>
    %3 = arith.subf %0, %2 : vector<4x32xf32>
    %c0_3 = arith.constant 0 : index
    %c0_4 = arith.constant 0 : index
    %4 = vector.load %arg3[%c0_3, %c0_4] : memref<1x32xf32, #tpu.memory_space<vmem>>, vector<1x32xf32>
    %5 = vector.broadcast %4 : vector<1x32xf32> to vector<4x32xf32>
    %6 = arith.mulf %3, %5 : vector<4x32xf32>
    %c0_5 = arith.constant 0 : index
    %c0_6 = arith.constant 0 : index
    %7 = vector.load %arg4[%c0_5, %c0_6] : memref<4x32xf32, #tpu.memory_space<vmem>>, vector<4x32xf32>
    tpu.vector_store %arg4[%c0_5, %c0_6], %6 {strides = array<i32>} : memref<4x32xf32, #tpu.memory_space<vmem>>, vector<4x32xf32>,
    return
  }
  func.func @transform_0(%arg0: i32) -> (i32, i32) {
    %c0_i32 = arith.constant 0 : i32
    %c0_i32_0 = arith.constant 0 : i32
    %c0_i32_1 = arith.constant 0 : i32
    return %c0_i32, %c0_i32_0 : i32, i32
  }
  func.func @transform_1(%arg0: i32) -> (i32, i32) {
    %c0_i32 = arith.constant 0 : i32
    %c0_i32_0 = arith.constant 0 : i32
    %c0_i32_1 = arith.constant 0 : i32
    return %c0_i32, %c0_i32_0 : i32, i32
  }
  func.func @transform_2(%arg0: i32) -> (i32, i32) {
    %c0_i32 = arith.constant 0 : i32
    %c0_i32_0 = arith.constant 0 : i32
    %c0_i32_1 = arith.constant 0 : i32
    return %c0_i32, %c0_i32_0 : i32, i32
  }
  func.func @transform_3(%arg0: i32) -> (i32, i32) {
    %c0_i32 = arith.constant 0 : i32
    %c0_i32_0 = arith.constant 0 : i32
    %c0_i32_1 = arith.constant 0 : i32
    return %c0_i32, %c0_i32_0 : i32, i32
  }
}

</mosaic_0001>

<bundles_post_ra>
// kernel: tpu_custom_call.1
= control target key start
LH: loop header
LB: loop body
LE: loop exit
PB: predicated region body
PF: predicated region fallthrough
CT: control target
= control target key end

     0   :  { %8 = vsyncpa [#allocation3], 0  ;;  %s143_s0 = inlined_call_operand.hbm [shape: f32[4,32], index: 0, kind: input, shape index: {}]   ;;  %s144_s1 = inlined_call_operand.vmem [shape: f32[1,32], index: 1, kind: input, shape index: {}]   ;;  %s145_s2 = inlined_call_operand.vmem [shape: f32[1,32], index: 2, kind: input, shape index: {}]   ;;  %s146_s3 = inlined_call_operand.hbm [shape: f32[4,32], index: 3, kind: output, shape index: {}]  }
   0x1   :  { %9 = vsyncpa [#allocation4], 0  ;;  %s109_s12 = smov [#allocation2]  }
   0x2   :  { %s16_s13 = sshll.u32 %s109_s12, 4  ;;  %s17_s13 = int_to_ptr.vmem [resolvable:$true] %s16_s13 }
   0x3   :  { %s73_s14 = scalar_lea.vmem %s17_s13, 64  ;;  %p78_p1 = scmp.lt.s32.totalorder %s17_s13, %s17_s13 }
   0x4   :  { %p74_p0 = scmp.ne.s32.totalorder %s17_s13, %s73_s14  ;;  %p79_p2 = scmp.lt.s32.totalorder %s73_s14, %s73_s14 }
   0x6   :  { %p80_p3 = por %p79_p2, %p78_p1 }
   0x8   :  { %p81_p4 = pnand %p80_p3, %p74_p0 }
   0xa   :  { %84 = shalt.err (!%p81_p4)
}
   0xb   :  { %19 = dma.hbm_to_vmem [thread:$0]  %s143_s0, 64, %s17_s13, [#allocation3]  }
   0xc   :  { %105 = dma.done.wait [#allocation3], 64  }
   0xd   :  { %106 = vsyncadd [#allocation3], 4294967232  ;;  %s110_s17 = smov [#allocation5]   ;;  %v27_v0 = vld [vmem:[#allocation2] sm:$0xf]  ;;  %vm44_vm0 = vcmask 257024  }
   0xe   :  { %s52_s18 = sshll.u32 %s110_s17, 4  ;;  %v61_v1 = vld [vmem:[%s144_s1] ss:$0 sm:$0xff]  ;;  %s53_s18 = int_to_ptr.vmem [resolvable:$true] %s52_s18 }
   0xf   :  { %v62_v2 = vld [vmem:[%s145_s2] ss:$0 sm:$0xff]  ;;  %v35_v3 = vsub.f32 %v27_v0, %v61_v1  ;;  %s85_s23 = scalar_lea.vmem %s53_s18, 64  ;;  %p90_p6 = scmp.lt.s32.totalorder %s53_s18, %s53_s18 }
  0x10   :  { %p86_p5 = scmp.ne.s32.totalorder %s53_s18, %s85_s23  ;;  %p91_p7 = scmp.lt.s32.totalorder %s85_s23, %s85_s23 }
  0x11   :  { %v43_v4 = vmul.f32 %v62_v2, %v35_v3 }
  0x12   :  { %p92_p8 = por %p91_p7, %p90_p6 }
  0x13   :  { %45 = vst.msk [vmem:[#allocation5] sm:$0xf] %vm44_vm0, %v43_v4 }
  0x14   :  { %p93_p9 = pnand %p92_p8, %p86_p5 }
  0x16   :  { %96 = shalt.err (!%p93_p9)
}
  0x17   :  { %55 = dma.vmem_to_hbm [thread:$0]  %s53_s18, 64, %s146_s3, [#allocation4]  }
  0x18   :  { %107 = dma.done.wait [#allocation4], 64  }
  0x19   :  { %108 = vsyncadd [#allocation4], 4294967232 }
  0x1a   :  { %59 = vsyncpa [#allocation3], 1 }
  0x1b   :  { %60 = vsyncpa [#allocation4], 1 }

</bundles_post_ra>
